<compile_context>
chip_gen: v5e
topology: v5e:2x2
jax: 0.10.0
libtpu: 0.0.40
codegen_flags: <defaults>
</compile_context>

<pallas_src>
import functools
import math

import jax
import jax.numpy as jnp
from jax.experimental import pallas as pl
from jax.experimental.pallas import tpu as pltpu


def _round_up(x: int, m: int) -> int:
    return ((x + m - 1) // m) * m


def _pick_tile(dim: int, desired: int, align: int, min_blocks: int = 1):
    """Pad `dim` to a multiple of `align`; choose a tile that is a multiple
    of `align`, divides the padded dim, is <= `desired`, and (if requested)
    yields at least `min_blocks` blocks (megacore occupancy)."""
    p = _round_up(max(dim, 1), align)
    units = p // align
    cap = max(desired // align, 1)
    if min_blocks > 1:
        cap = min(cap, max(units // min_blocks, 1))
    best = 1
    d = 1
    while d * d <= units:
        if units % d == 0:
            for c in (d, units // d):
                if c <= cap and c > best:
                    best = c
        d += 1
    return p, best * align


def _pad2d(a, rows: int, cols: int):
    """Zero-pad a 2-D array to (rows, cols); identity when already sized."""
    r, c = a.shape
    if r == rows and c == cols:
        return a
    return jnp.pad(a, ((0, rows - r), (0, cols - c)))


# ---------------------------------------------------------------------------
# Kernels
# ---------------------------------------------------------------------------


def _fused_gcn_kernel(adj_ref, x_ref, w_ref, *rest, compute_dtype, has_bias):
    """out[i,:] = (sum_k adj[i,k] @ x[k,:]) @ weight (+ bias).

    Grid = (i over adj row tiles, k over adj column tiles).  adj stays f32 in
    HBM and is cast to the compute dtype on the VPU; weight/bias are
    VMEM-resident (constant index maps); the second matmul + bias ride in the
    k == last finalize branch.
    """
    if has_bias:
        bias_ref, o_ref, acc_ref = rest
    else:
        o_ref, acc_ref = rest
        bias_ref = None

    k = pl.program_id(1)

    @pl.when(k == 0)
    def _init():
        acc_ref[...] = jnp.zeros_like(acc_ref)

    acc_ref[...] += jnp.dot(
        adj_ref[...].astype(compute_dtype),
        x_ref[...].astype(compute_dtype),
        preferred_element_type=jnp.float32,
    )

    @pl.when(k == pl.num_programs(1) - 1)
    def _finalize():
        out = jnp.dot(
            acc_ref[...].astype(compute_dtype),
            w_ref[...],
            preferred_element_type=jnp.float32,
        )
        if has_bias:
            out = out + bias_ref[...]
        o_ref[...] = out.astype(o_ref.dtype)


def _matmul_kernel(a_ref, b_ref, *rest, compute_dtype, has_bias):
    """Generic tiled out = a @ b (+ bias); operands cast in-kernel."""
    if has_bias:
        bias_ref, o_ref, acc_ref = rest
    else:
        o_ref, acc_ref = rest
        bias_ref = None

    k = pl.program_id(2)

    @pl.when(k == 0)
    def _init():
        acc_ref[...] = jnp.zeros_like(acc_ref)

    acc_ref[...] += jnp.dot(
        a_ref[...].astype(compute_dtype),
        b_ref[...].astype(compute_dtype),
        preferred_element_type=jnp.float32,
    )

    @pl.when(k == pl.num_programs(2) - 1)
    def _finalize():
        out = acc_ref[...]
        if has_bias:
            out = out + bias_ref[...]
        o_ref[...] = out.astype(o_ref.dtype)


# ---------------------------------------------------------------------------
# Wrappers
# ---------------------------------------------------------------------------


def _vmem_limit(vmem_bytes: int) -> int:
    # Exact tile footprint + headroom for Mosaic internal scratch, capped
    # safely below v7x's 64 MiB physical VMEM.
    return min(max(int(vmem_bytes * 1.25) + (8 << 20), 32 << 20), 60 << 20)


def _tiled_matmul(a, b, bias=None, *, out_dtype, compute_dtype,
                  tm_desired=512, tn_desired=1024, tk_desired=1024,
                  min_row_blocks=1):
    """out = a @ b (+ bias).  a and b stay in their HBM dtype (no wrapper
    cast copies) and are cast to `compute_dtype` inside the kernel."""
    M, K = a.shape
    K2, N = b.shape
    assert K == K2, (a.shape, b.shape)

    row_align = 16 if jnp.dtype(out_dtype).itemsize < 4 else 8
    Mp, tm = _pick_tile(M, tm_desired, row_align, min_blocks=min_row_blocks)
    Kp, tk = _pick_tile(K, tk_desired, 128)
    Np, tn = _pick_tile(N, tn_desired, 128)

    a_p = _pad2d(a, Mp, Kp)            # identity when already aligned
    b_p = _pad2d(b, Kp, Np)

    grid = (Mp // tm, Np // tn, Kp // tk)

    in_specs = [pl.BlockSpec((tm, tk), lambda i, j, k: (i, k)),
                pl.BlockSpec((tk, tn), lambda i, j, k: (k, j))]
    inputs = [a_p, b_p]
    has_bias = bias is not None
    if has_bias:
        bias_p = _pad2d(bias.reshape(1, -1).astype(jnp.float32), 1, Np)
        in_specs.append(pl.BlockSpec((1, tn), lambda i, j, k: (0, j)))
        inputs.append(bias_p)

    a_by = jnp.dtype(a_p.dtype).itemsize
    b_by = jnp.dtype(b_p.dtype).itemsize
    o_by = jnp.dtype(out_dtype).itemsize
    vmem_bytes = (2 * tm * tk * a_by      # double-buffered A tiles
                  + 2 * tk * tn * b_by    # double-buffered B tiles
                  + tm * tn * 4           # f32 accumulator scratch
                  + 2 * tm * tn * o_by    # double-buffered output tiles
                  + 2 * tn * 4)           # bias row

    kernel = functools.partial(_matmul_kernel, compute_dtype=compute_dtype,
                               has_bias=has_bias)
    out_p = pl.pallas_call(
        kernel,
        out_shape=jax.ShapeDtypeStruct((Mp, Np), out_dtype),
        grid=grid,
        in_specs=in_specs,
        out_specs=pl.BlockSpec((tm, tn), lambda i, j, k: (i, j)),
        scratch_shapes=[pltpu.VMEM((tm, tn), jnp.float32)],
        compiler_params=pltpu.CompilerParams(
            dimension_semantics=("parallel", "parallel", "arbitrary"),
            vmem_limit_bytes=_vmem_limit(vmem_bytes)),
    )(*inputs)

    if (Mp, Np) != (M, N):
        out_p = out_p[:M, :N]
    return out_p


def _fused_gcn(adj, x, weight, bias, *, out_dtype, compute_dtype,
               tm_desired=512, tk_desired=1024):
    """Single-call fused GCN for in_f <= out_f.  Returns None if the feature
    widths are too large to keep weight / acc / output blocks VMEM-resident;
    the caller then falls back to the two-call path."""
    n = adj.shape[0]
    in_f = x.shape[1]
    out_f = weight.shape[1]

    # Rows split into >= 2 blocks when possible so both v7x TCs get work.
    Mp, tm = _pick_tile(n, tm_desired, 8, min_blocks=2)
    Kp, tk = _pick_tile(n, tk_desired, 128)

    c_by = jnp.dtype(compute_dtype).itemsize
    vmem_bytes = (2 * tm * tk * 4             # adj tiles (f32 straight from HBM)
                  + 2 * tk * in_f * c_by      # x tiles
                  + 2 * in_f * out_f * c_by   # resident weight (counted 2x)
                  + tm * in_f * 4             # f32 accumulator
                  + 2 * tm * out_f * 4        # output tiles (f32)
                  + out_f * 4)                # bias
    if vmem_bytes > (40 << 20):
        return None

    adj_p = _pad2d(adj, Mp, Kp)                          # stays f32, no cast
    x_p = _pad2d(x.astype(compute_dtype), Kp, in_f)      # small arrays only
    w_c = weight.astype(compute_dtype)

    grid = (Mp // tm, Kp // tk)

    in_specs = [pl.BlockSpec((tm, tk), lambda i, k: (i, k)),     # adj
                pl.BlockSpec((tk, in_f), lambda i, k: (k, 0)),   # x
                pl.BlockSpec((in_f, out_f), lambda i, k: (0, 0))]  # weight
    inputs = [adj_p, x_p, w_c]
    has_bias = bias is not None
    if has_bias:
        in_specs.append(pl.BlockSpec((1, out_f), lambda i, k: (0, 0)))
        inputs.append(bias.reshape(1, out_f).astype(jnp.float32))

    kernel = functools.partial(_fused_gcn_kernel, compute_dtype=compute_dtype,
                               has_bias=has_bias)
    out_p = pl.pallas_call(
        kernel,
        out_shape=jax.ShapeDtypeStruct((Mp, out_f), out_dtype),
        grid=grid,
        in_specs=in_specs,
        out_specs=pl.BlockSpec((tm, out_f), lambda i, k: (i, 0)),
        scratch_shapes=[pltpu.VMEM((tm, in_f), jnp.float32)],
        compiler_params=pltpu.CompilerParams(
            dimension_semantics=("parallel", "arbitrary"),
            vmem_limit_bytes=_vmem_limit(vmem_bytes)),
    )(*inputs)

    if Mp != n:
        out_p = out_p[:n]
    return out_p


def graph_convolution(x, adj, weight, bias=None, *, use_bf16=True):
    """Pallas GCN layer: adj @ (x @ weight) + bias (reassociated when that is
    cheaper -- rounding differs slightly from a strict left-to-right order).

    x:      (N, in_features)  float32 node features
    adj:    (N, N)            float32 dense normalized adjacency
    weight: (in_features, out_features)
    bias:   (out_features,) or None
    use_bf16: feed the MXU bf16 operands (f32 accumulation).  adj stays f32
              in HBM and is cast in-kernel either way.
    """
    n, in_f = x.shape
    in_f2, out_f = weight.shape
    assert in_f == in_f2 and adj.shape == (n, n)

    compute_dtype = jnp.bfloat16 if use_bf16 else jnp.float32
    out_dtype = x.dtype

    if in_f <= out_f:
        # (adj @ x) @ weight fused into one kernel: the dominant N*N stream
        # contracts over the smaller in_f and the weight multiply + bias run
        # in the finalize branch.
        out = _fused_gcn(adj, x, weight, bias,
                         out_dtype=out_dtype, compute_dtype=compute_dtype)
        if out is not None:
            return out
        # Features too wide to keep resident: two tiled calls, same
        # association, intermediate emitted in the compute dtype.
        t = _tiled_matmul(adj, x, None, out_dtype=compute_dtype,
                          compute_dtype=compute_dtype, min_row_blocks=2)
        return _tiled_matmul(t, weight, bias, out_dtype=out_dtype,
                             compute_dtype=compute_dtype)

    # in_f > out_f: support = x @ weight first (contracts the dominant matmul
    # over the smaller out_f); support emitted in the compute dtype so the
    # second call reads it with no re-cast pass.
    support = _tiled_matmul(x, weight, None, out_dtype=compute_dtype,
                            compute_dtype=compute_dtype)
    return _tiled_matmul(adj, support, bias, out_dtype=out_dtype,
                         compute_dtype=compute_dtype, min_row_blocks=2)


if __name__ == "__main__":
    # Small deterministic example consistent with the module's forward.
    N, IN_F, OUT_F = 16, 8, 32

    key = jax.random.PRNGKey(0)
    k_x, k_adj, k_w, k_b = jax.random.split(key, 4)

    # Node features.
    x = jax.random.normal(k_x, (N, IN_F), dtype=jnp.float32)

    # Symmetric row-normalized adjacency with self-loops (dense).
    a = (jax.random.uniform(k_adj, (N, N)) > 0.7).astype(jnp.float32)
    a = jnp.maximum(a, a.T) + jnp.eye(N, dtype=jnp.float32)
    adj = a / jnp.sum(a, axis=1, keepdims=True)

    # Parameters, mimicking reset_parameters(): uniform(-stdv, stdv).
    stdv = 1.0 / math.sqrt(OUT_F)
    weight = jax.random.uniform(
        k_w, (IN_F, OUT_F), minval=-stdv, maxval=stdv, dtype=jnp.float32)
    bias = jax.random.uniform(
        k_b, (OUT_F,), minval=-stdv, maxval=stdv, dtype=jnp.float32)

    ref = adj @ (x @ weight) + bias

    # 1) Strict f32 path (fused kernel; only reassociation rounding).
    out_f32 = jax.block_until_ready(
        graph_convolution(x, adj, weight, bias, use_bf16=False))
    assert out_f32.shape == (N, OUT_F)
    assert jnp.allclose(out_f32, ref, atol=1e-4, rtol=1e-4)

    # 2) Default bf16-MXU path (f32 accumulation; looser tolerance).
    out_bf16 = jax.block_until_ready(
        graph_convolution(x, adj, weight, bias, use_bf16=True))
    assert jnp.allclose(out_bf16, ref, atol=5e-2, rtol=5e-2)

    # 3) bias=None variant (kernel compiled without the bias input / add).
    out_nb = jax.block_until_ready(
        graph_convolution(x, adj, weight, None, use_bf16=False))
    assert jnp.allclose(out_nb, adj @ (x @ weight), atol=1e-4, rtol=1e-4)

    # 4) in_f > out_f branch (two-call path, other matmul association).
    stdv2 = 1.0 / math.sqrt(IN_F)
    w2 = jax.random.uniform(
        k_w, (OUT_F, IN_F), minval=-stdv2, maxval=stdv2, dtype=jnp.float32)
    b2 = jax.random.uniform(
        k_b, (IN_F,), minval=-stdv2, maxval=stdv2, dtype=jnp.float32)
    x2 = jax.random.normal(k_x, (N, OUT_F), dtype=jnp.float32)
    out2 = jax.block_until_ready(
        graph_convolution(x2, adj, w2, b2, use_bf16=False))
    assert jnp.allclose(out2, adj @ (x2 @ w2) + b2, atol=1e-4, rtol=1e-4)

    # 5) bf16 path through the two-call (in_f > out_f) branch.
    out2_bf16 = jax.block_until_ready(
        graph_convolution(x2, adj, w2, b2, use_bf16=True))
    assert jnp.allclose(out2_bf16, adj @ (x2 @ w2) + b2, atol=5e-2, rtol=5e-2)

    print("KERNEL_OK")
</pallas_src>

<mosaic_0001>
module attributes {stable_mosaic.version = 11 : i64} {
  func.func @_fused_gcn_kernel(%arg0: i32, %arg1: i32, %arg2: memref<8x128xf32, #tpu.memory_space<vmem>>, %arg3: memref<128x8xf32, #tpu.memory_space<vmem>>, %arg4: memref<8x32xf32, #tpu.memory_space<vmem>>, %arg5: memref<1x32xf32, #tpu.memory_space<vmem>>, %arg6: memref<8x32xf32, #tpu.memory_space<vmem>>, %arg7: memref<8x8xf32, #tpu.memory_space<vmem>>) attributes {dimension_semantics = [#tpu.dimension_semantics<parallel>, #tpu.dimension_semantics<arbitrary>], iteration_bounds = array<i64: 2, 1>, scalar_prefetch = 0 : i64, scratch_operands = 1 : i64, tpu.core_type = #tpu.core_type<tc>, window_params = [{transform_indices = @transform_0, window_bounds = array<i64: 8, 128>}, {transform_indices = @transform_1, window_bounds = array<i64: 128, 8>}, {pipeline_mode = #tpu.pipeline_mode<synchronous>, transform_indices = @transform_2, window_bounds = array<i64: 8, 32>}, {pipeline_mode = #tpu.pipeline_mode<synchronous>, transform_indices = @transform_3, window_bounds = array<i64: 1, 32>}, {transform_indices = @transform_4, window_bounds = array<i64: 8, 32>}]} {
    %c0_i32 = arith.constant 0 : i32
    %0 = arith.cmpi eq, %arg1, %c0_i32 : i32
    %1 = arith.extui %0 : i1 to i32
    %c0_i32_0 = arith.constant 0 : i32
    %2 = arith.cmpi ne, %1, %c0_i32_0 : i32
    scf.if %2 {
      %cst_10 = arith.constant 0.000000e+00 : f32
      %12 = vector.broadcast %cst_10 : f32 to vector<8x8xf32>
      %c0_11 = arith.constant 0 : index
      %c0_12 = arith.constant 0 : index
      %13 = vector.load %arg7[%c0_11, %c0_12] : memref<8x8xf32, #tpu.memory_space<vmem>>, vector<8x8xf32>
      tpu.vector_store %arg7[%c0_11, %c0_12], %12 {strides = array<i32>} : memref<8x8xf32, #tpu.memory_space<vmem>>, vector<8x8xf32>,
    } else {
    }
    %c0 = arith.constant 0 : index
    %c0_1 = arith.constant 0 : index
    %3 = vector.load %arg7[%c0, %c0_1] : memref<8x8xf32, #tpu.memory_space<vmem>>, vector<8x8xf32>
    %c0_2 = arith.constant 0 : index
    %c0_3 = arith.constant 0 : index
    %4 = vector.load %arg2[%c0_2, %c0_3] : memref<8x128xf32, #tpu.memory_space<vmem>>, vector<8x128xf32>
    %c0_4 = arith.constant 0 : index
    %c0_5 = arith.constant 0 : index
    %5 = vector.load %arg3[%c0_4, %c0_5] : memref<128x8xf32, #tpu.memory_space<vmem>>, vector<128x8xf32>
    %cst = arith.constant dense<0.000000e+00> : vector<8x8xf32>
    %6 = tpu.matmul %4, %5, %cst {dimension_numbers = #tpu.dot_dimension_numbers<[1], [0], [0], [1], [0, 0, 1, 1], [], []>} : vector<8x128xf32>, vector<128x8xf32>, vector<8x8xf32> -> vector<8x8xf32>
    %7 = arith.addf %3, %6 : vector<8x8xf32>
    %c0_6 = arith.constant 0 : index
    %c0_7 = arith.constant 0 : index
    %8 = vector.load %arg7[%c0_6, %c0_7] : memref<8x8xf32, #tpu.memory_space<vmem>>, vector<8x8xf32>
    tpu.vector_store %arg7[%c0_6, %c0_7], %7 {strides = array<i32>} : memref<8x8xf32, #tpu.memory_space<vmem>>, vector<8x8xf32>,
    %c0_i32_8 = arith.constant 0 : i32
    %9 = arith.cmpi eq, %arg1, %c0_i32_8 : i32
    %10 = arith.extui %9 : i1 to i32
    %c0_i32_9 = arith.constant 0 : i32
    %11 = arith.cmpi ne, %10, %c0_i32_9 : i32
    scf.if %11 {
      %c0_10 = arith.constant 0 : index
      %c0_11 = arith.constant 0 : index
      %12 = vector.load %arg7[%c0_10, %c0_11] : memref<8x8xf32, #tpu.memory_space<vmem>>, vector<8x8xf32>
      %c0_12 = arith.constant 0 : index
      %c0_13 = arith.constant 0 : index
      %13 = vector.load %arg4[%c0_12, %c0_13] : memref<8x32xf32, #tpu.memory_space<vmem>>, vector<8x32xf32>
      %cst_14 = arith.constant dense<0.000000e+00> : vector<8x32xf32>
      %14 = tpu.matmul %12, %13, %cst_14 {dimension_numbers = #tpu.dot_dimension_numbers<[1], [0], [0], [1], [0, 0, 1, 1], [], []>} : vector<8x8xf32>, vector<8x32xf32>, vector<8x32xf32> -> vector<8x32xf32>
      %c0_15 = arith.constant 0 : index
      %c0_16 = arith.constant 0 : index
      %15 = vector.load %arg5[%c0_15, %c0_16] : memref<1x32xf32, #tpu.memory_space<vmem>>, vector<1x32xf32>
      %16 = vector.broadcast %15 : vector<1x32xf32> to vector<8x32xf32>
      %17 = arith.addf %14, %16 : vector<8x32xf32>
      %c0_17 = arith.constant 0 : index
      %c0_18 = arith.constant 0 : index
      %18 = vector.load %arg6[%c0_17, %c0_18] : memref<8x32xf32, #tpu.memory_space<vmem>>, vector<8x32xf32>
      tpu.vector_store %arg6[%c0_17, %c0_18], %17 {strides = array<i32>} : memref<8x32xf32, #tpu.memory_space<vmem>>, vector<8x32xf32>,
    } else {
    }
    return
  }
  func.func @transform_0(%arg0: i32, %arg1: i32) -> (i32, i32) {
    %c0_i32 = arith.constant 0 : i32
    return %arg0, %arg1 : i32, i32
  }
  func.func @transform_1(%arg0: i32, %arg1: i32) -> (i32, i32) {
    %c0_i32 = arith.constant 0 : i32
    %c0_i32_0 = arith.constant 0 : i32
    return %arg1, %c0_i32 : i32, i32
  }
  func.func @transform_2(%arg0: i32, %arg1: i32) -> (i32, i32) {
    %c0_i32 = arith.constant 0 : i32
    %c0_i32_0 = arith.constant 0 : i32
    %c0_i32_1 = arith.constant 0 : i32
    return %c0_i32, %c0_i32_0 : i32, i32
  }
  func.func @transform_3(%arg0: i32, %arg1: i32) -> (i32, i32) {
    %c0_i32 = arith.constant 0 : i32
    %c0_i32_0 = arith.constant 0 : i32
    %c0_i32_1 = arith.constant 0 : i32
    return %c0_i32, %c0_i32_0 : i32, i32
  }
  func.func @transform_4(%arg0: i32, %arg1: i32) -> (i32, i32) {
    %c0_i32 = arith.constant 0 : i32
    %c0_i32_0 = arith.constant 0 : i32
    return %arg0, %c0_i32 : i32, i32
  }
}

</mosaic_0001>

<bundles_post_ra>
// kernel: tpu_custom_call.1
= control target key start
LH: loop header
LB: loop body
LE: loop exit
PB: predicated region body
PF: predicated region fallthrough
CT: control target
= control target key end

     0   :  { %9 = vsyncpa [#allocation4], 0  ;;  %s750_s0 = inlined_call_operand.vmem [shape: f32[16,128], index: 0, kind: input, shape index: {}]   ;;  %s751_s1 = inlined_call_operand.vmem [shape: f32[128,8], index: 1, kind: input, shape index: {}]   ;;  %s752_s2 = inlined_call_operand.vmem [shape: f32[8,32], index: 2, kind: input, shape index: {}]   ;;  %s753_s3 = inlined_call_operand.vmem [shape: f32[1,32], index: 3, kind: input, shape index: {}]   ;;  %s754_s4 = inlined_call_operand.hbm [shape: f32[16,32], index: 4, kind: output, shape index: {}]  }
   0x1   :  { %11 = vsyncpa [#allocation4 + $0x1], 0  ;;  %s596_s15 = smov 0   ;;  %s598_s16 = smov 0  }
   0x2   :  { %s600_s17 = smov 0   ;;  %s602_s18 = smov 0  }
   0x3   :  { %s604_s19 = smov 0   ;;  %s606_s20 = smov 0  }
   0x4 LB: > { %s420_s21 = sadd.s32 4294967295, %s568_s20   ;;  %s421_s22 = sadd.s32 4294967294, %s568_s20   ;;  %s568_s20 = sphi %s606_s20, %s17_s20   ;;  %s564_s19 = sphi %s604_s19, %s761_s19   ;;  %s560_s18 = sphi %s602_s18, %s760_s18   ;;  %s556_s17 = sphi %s600_s17, %s759_s17   ;;  %s552_s16 = sphi %s598_s16, %s758_s16   ;;  %s548_s15 = sphi %s596_s15, %s757_s15  }
   0x5   : > { %s29_s23 = sadd.s32 1, %s564_s19  ;;  %s132_s24 = sadd.s32 1, %s556_s17 }
   0x6   : > { %p31_p0 = scmp.ge.s32.totalorder %s29_s23, 2  ;;  %p142_p1 = scmp.ne.s32.totalorder %s556_s17, %s552_s16 }
   0x7   : > { %p143_p2 = scmp.eq.s32.totalorder %s420_s21, 1  ;;  %p148_p3 = scmp.ne.s32.totalorder %s552_s16, %s548_s15 }
   0x8   : > { %s763_s23 = smov (%p31_p0, %s29_s23), 0  ;;  %p149_p5 = scmp.eq.s32.totalorder %s421_s22, 1 }
   0x9   : > { %p636_p4 = por %p143_p2, %p142_p1  ;;  %s129_s26 = ssub.s32 %s564_s19, %s763_s23 }
   0xa   : > { %p425_p6 = scmp.ge.s32.totalorder %s568_s20, 1  ;;  %p130_p7 = scmp.eq.s32.totalorder %s129_s26, 0 }
   0xb   : > { %p643_p8 = por %p149_p5, %p148_p3  ;;  %p192_p9 = scmp.lt.s32.totalorder %s568_s20, 3 }
   0xc   : > { %s649_s28 = scalar_select %p130_p7, %s556_s17, %s132_s24  }
   0xd   : > { %p193_p10 = pnand %p425_p6, %p192_p9 }
   0xe   : > { %p225_p11 = scmp.lt.s32.totalorder (!%p193_p10), %s560_s18, 1  ;;  %s222_s10 = sand.u32 (!%p193_p10), 1, %s552_s16  }
   0xf   : > { %196 = sbr.rel (%p193_p10) target bundleno = 319 (0x13f), region = 36  ;;  %s426_s11 = sshll.u32 (!%p193_p10), %s222_s10, 3 }
  0x10   : > { %s430_s12 = sshll.u32 (!%p193_p10), %s560_s18, 3  ;;  %s224_s26 = scalar_lea.vmem (!%p193_p10), [#allocation3], %s426_s11 }
  0x11   : > { %s330_s21 = scalar_lea.hbm (!%p193_p10), %s754_s4, %s430_s12  ;;  %s332_s29 = sshll.u32 (!%p193_p10), %s224_s26, 4  ;;  %s333_s29 = int_to_ptr.vmem [resolvable:$true] %s332_s29 }
  0x12   : > { %s334_s30 = sshll.u32 (!%p193_p10), %s330_s21, 4  ;;  %s335_s30 = int_to_ptr.hbm [resolvable:$true] %s334_s30 }
  0x14   : > { %v261_v0 = vld [vmem:[%s751_s1 + $0x78] sm:$0xff]  ;;  %v260_v1 = vld [vmem:[%s751_s1 + $0x70] sm:$0xff]  ;;  %vm242_vm0 = vcmask 64512   ;;  %v570_v2 = vmov 0.0   ;;  %v259_v3 = vld [vmem:[%s751_s1 + $0x68] sm:$0xff]  ;;  %s226_s9 = scalar_select %p225_p11, %s560_s18, 1 }
  0x15   : > { %262 = vmatpush.msra.mxu0 %v261_v0  ;;  %243 = vst.msk [vmem:[#allocation2] sm:$0xff] %vm242_vm0, %v570_v2  ;;  %v258_v4 = vld [vmem:[%s751_s1 + $0x60] sm:$0xff]  ;;  %v257_v5 = vld [vmem:[%s751_s1 + $0x58] sm:$0xff]  ;;  %v256_v6 = vld [vmem:[%s751_s1 + $0x50] sm:$0xff]  ;;  %vm317_vm1 = vcmask 261120   ;;  %s504_s18 = sshra.s32 %s335_s30, 4  ;;  %s505_s18 = int_to_ptr.hbm [resolvable:$true] %s504_s18 }
  0x16   : > { %v255_v7 = vld [vmem:[%s751_s1 + $0x48] sm:$0xff]  ;;  %v254_v8 = vld [vmem:[%s751_s1 + $0x40] sm:$0xff]  ;;  %v253_v9 = vld [vmem:[%s751_s1 + $0x38] sm:$0xff]  ;;  %s427_s14 = sshll.u32 %s226_s9, 3  ;;  %s506_s6 = scalar_lea.hbm %s505_s18, 8 }
  0x17   : > { %263 = vmatpush.msra.mxu0 %v260_v1  ;;  %v252_v10 = vld [vmem:[%s751_s1 + $0x30] sm:$0xff]  ;;  %v251_v11 = vld [vmem:[%s751_s1 + $0x28] sm:$0xff]  ;;  %v250_v12 = vld [vmem:[%s751_s1 + $0x20] sm:$0xff]  ;;  %s231_s5 = scalar_lea.vmem %s750_s0, %s427_s14  ;;  %p507_p12 = scmp.ne.s32.totalorder %s505_s18, %s506_s6 }
  0x18   : > { %v249_v13 = vld [vmem:[%s751_s1 + $0x18] sm:$0xff]  ;;  %v248_v14 = vld [vmem:[%s751_s1 + $0x10] sm:$0xff]  ;;  %v247_v15 = vld [vmem:[%s751_s1 + $0x8] sm:$0xff]  ;;  %s510_s9 = scalar_lea.hbm %s754_s4, 16  ;;  %p511_p1 = scmp.lt.s32.totalorder %s505_s18, %s754_s4 }
  0x19   : > { %264 = vmatpush.msra.mxu0 %v259_v3  ;;  %v246_v16 = vld [vmem:[%s751_s1] sm:$0xff]  ;;  %p508_p13 = pnand %p507_p12, %p636_p4  ;;  %p512_p2 = scmp.lt.s32.totalorder %s510_s9, %s506_s6 }
  0x1a   : > { %v245_v17 = vld [vmem:[%s231_s5] sm:$0xff]  ;;  %s320_s5 = scalar_lea.sflag [#allocation4], %s222_s10 }
  0x1b   : > { %265 = vmatpush.msra.mxu0 %v258_v4  ;;  %v289_v18 = vld [vmem:[%s752_s2] sm:$0xff]  ;;  %p509_p0 = pneg %p508_p13  ;;  %p513_p3 = por %p512_p2, %p511_p1 }
  0x1c   : > { %312 = vmatpush.msra.mxu1 %v289_v18  ;;  %v244_v19 = vld [vmem:[#allocation2] sm:$0xff] }
  0x1d   : > { %266 = vmatpush.msra.mxu0 %v257_v5  ;;  %v489_v23 = vld [vmem:[%s753_s3] ss:$0 sm:$0xff]  ;;  %p514_p5 = pnand %p513_p3, %p509_p0 }
  0x1f   : > { %267 = vmatpush.msra.mxu0 %v256_v6 }
  0x21   : > { %268 = vmatpush.msra.mxu0 %v255_v7 }
  0x23   : > { %269 = vmatpush.msra.mxu0 %v254_v8 }
  0x25   : > { %270 = vmatpush.msra.mxu0 %v253_v9 }
  0x27   : > { %271 = vmatpush.msra.mxu0 %v252_v10 }
  0x29   : > { %272 = vmatpush.msra.mxu0 %v251_v11 }
  0x2b   : > { %273 = vmatpush.msra.mxu0 %v250_v12 }
  0x2d   : > { %274 = vmatpush.msra.mxu0 %v249_v13 }
  0x2f   : > { %275 = vmatpush.msra.mxu0 %v248_v14 }
  0x31   : > { %276 = vmatpush.msra.mxu0 %v247_v15 }
  0x33   : > { %277 = vmatpush.msra.mxu0 %v246_v16 }
  0x34   : > { %278 = vmatmul.f32.vlgmr.msra.gmra.mxu0 %v245_v17 }
  0xb1   : > { %v279_v20 = vpop.f32.mrf.mxu0 }
  0xb2   : > { %v282_v21 = vadd.f32 %v279_v20, %v244_v19 }
  0xb4   : > { %284 = vst.msk [vmem:[#allocation2] sm:$0xff] %vm242_vm0, %v282_v21 }
  0xbb   : > { %v288_v22 = vld [vmem:[#allocation2] sm:$0xff] }
  0xbc   : > { %428 = vmatmul.msk.f32.vlgmr.msra.gmra.mxu1 %vm242_vm0, %v288_v22 }
 0x139   : > { %v314_v24 = vpop.f32.mrf.mxu1 }
 0x13a   : > { %v315_v25 = vadd.f32 %v489_v23, %v314_v24 }
 0x13c   : > { %318 = vst.msk [vmem:[%s224_s26] sm:$0xff] %vm317_vm1, %v315_v25 }
 0x13d   : > { %517 = shalt.err (!%p514_p5)
}
 0x13e   : > { %433 = dma.vmem_to_hbm [thread:$0]  (%p636_p4), %s333_s29, 128, %s335_s30, %s320_s5  }
 0x13f PF: > { %p439_p6 = scmp.ge.s32.totalorder %s568_s20, 2  ;;  %s346_s10 = sand.u32 1, %s548_s15  }
 0x140   : > { %s347_s13 = scalar_lea.sflag [#allocation4], %s346_s10 }
 0x141   : > { %p436_p7 = pnand %p439_p6, %p643_p8 }
 0x143   : > { %p437_p9 = pneg %p436_p7 }
 0x145   : > { %543 = dma.done.wait (%p437_p9), %s347_s13, 128  }
 0x146   : > { %545 = vsyncadd (%p437_p9), %s347_s13, 4294967168  ;;  %s17_s20 = sadd.s32 1, %s568_s20   ;;  %s757_s15 = smov %s552_s16 }
 0x147   : > { %p14_p10 = scmp.ge.s32.totalorder %s17_s20, 4   ;;  %s758_s16 = smov %s556_s17 }
 0x148   : > { %s759_s17 = smov %s649_s28  ;;  %s760_s18 = smov %s564_s19 }
 0x149   : > { %s761_s19 = smov %s763_s23  ;;  %16 = sbr.rel (!%p14_p10) target bundleno = 4 (0x4), region = 82 }
 0x14e   :  { %353 = vsyncpa [#allocation4], 1 }
 0x14f   :  { %355 = vsyncpa [#allocation4 + $0x1], 1 }

</bundles_post_ra>
